<compile_context>
chip_gen: v7x
topology: tpu7x:2x2x1
jax: 0.10.0
libtpu: 0.0.40
codegen_flags: <defaults>
</compile_context>

<pallas_src>
import functools

import jax
import jax.numpy as jnp
from jax.experimental import pallas as pl
from jax.experimental.pallas import tpu as pltpu


def _round_up(x, m):
    return ((x + m - 1) // m) * m


def _actor_kernel(x_ref, w1_ref, b1_ref, w2_ref, b2_ref, w3_ref, b3_ref,
                  out_ref, *, max_action):
    # layer 1: (TM, S)bf16 @ (S, 256)bf16 -> f32 acc, +bias, relu (f32 epilogue)
    x = x_ref[...].astype(jnp.bfloat16)
    h1 = jnp.dot(x, w1_ref[...], preferred_element_type=jnp.float32)
    h1 = jnp.maximum(h1 + b1_ref[...], 0.0)
    # layer 2: (TM, 256)bf16 @ (256, 256)bf16 -> f32 acc, +bias, relu
    h2 = jnp.dot(h1.astype(jnp.bfloat16), w2_ref[...],
                 preferred_element_type=jnp.float32)
    h2 = jnp.maximum(h2 + b2_ref[...], 0.0)
    # layer 3: (TM, 256)bf16 @ (256, A_pad)bf16 -> f32 acc, +bias, scaled tanh
    a = jnp.dot(h2.astype(jnp.bfloat16), w3_ref[...],
                preferred_element_type=jnp.float32)
    a = a + b3_ref[...]
    out_ref[...] = (max_action * jnp.tanh(a)).astype(out_ref.dtype)


def actor_forward(state, params, max_action, *, block_b=512):
    """state: (B, state_dim) f32. params: dict of W1,b1,W2,b2,W3,b3."""
    B, S = state.shape
    H = params["W1"].shape[1]
    A = params["W3"].shape[1]

    # Lane-dense output: pad action_dim to a multiple of 128 lanes.
    A_pad = _round_up(A, 128)
    # Batch tile: sublane-aligned (multiple of 8), capped at block_b.
    TM = min(block_b, _round_up(B, 8))
    B_pad = _round_up(B, TM)

    # Matmul operands in bf16 (f32 accumulation inside the kernel).
    W1 = params["W1"].astype(jnp.bfloat16)
    W2 = params["W2"].astype(jnp.bfloat16)
    W3 = params["W3"].astype(jnp.bfloat16)
    # Biases stay f32 (epilogue runs in f32), reshaped to (1, N) 2-D tiles.
    b1 = params["b1"].reshape(1, H).astype(jnp.float32)
    b2 = params["b2"].reshape(1, H).astype(jnp.float32)
    b3 = params["b3"].reshape(1, A).astype(jnp.float32)

    if A_pad != A:
        W3 = jnp.pad(W3, ((0, 0), (0, A_pad - A)))
        b3 = jnp.pad(b3, ((0, 0), (0, A_pad - A)))

    x = state.astype(jnp.float32)
    if B_pad != B:
        x = jnp.pad(x, ((0, B_pad - B), (0, 0)))

    grid = (B_pad // TM,)

    flops = 2 * B_pad * (S * H + H * H + H * A_pad)
    bytes_accessed = (x.size * 4                       # state in
                      + (W1.size + W2.size + W3.size) * 2   # bf16 weights
                      + (b1.size + b2.size + b3.size) * 4   # f32 biases
                      + B_pad * A_pad * 4)             # output
    cost = pl.CostEstimate(flops=int(flops),
                           transcendentals=int(B_pad * A_pad),
                           bytes_accessed=int(bytes_accessed))

    kernel = functools.partial(_actor_kernel, max_action=float(max_action))

    out = pl.pallas_call(
        kernel,
        out_shape=jax.ShapeDtypeStruct((B_pad, A_pad), jnp.float32),
        grid=grid,
        in_specs=[
            pl.BlockSpec((TM, S), lambda i: (i, 0)),       # state: batch-tiled
            pl.BlockSpec((S, H), lambda i: (0, 0)),        # W1: VMEM-resident
            pl.BlockSpec((1, H), lambda i: (0, 0)),        # b1
            pl.BlockSpec((H, H), lambda i: (0, 0)),        # W2
            pl.BlockSpec((1, H), lambda i: (0, 0)),        # b2
            pl.BlockSpec((H, A_pad), lambda i: (0, 0)),    # W3 (lane-padded)
            pl.BlockSpec((1, A_pad), lambda i: (0, 0)),    # b3 (lane-padded)
        ],
        out_specs=pl.BlockSpec((TM, A_pad), lambda i: (i, 0)),
        compiler_params=pltpu.CompilerParams(
            dimension_semantics=("parallel",)),
        cost_estimate=cost,
    )(x, W1, b1, W2, b2, W3, b3)

    return out[:B, :A]


def init_actor_params(key, state_dim, action_dim, hidden=256):
    """Deterministic init mirroring PyTorch Linear default (uniform +/- 1/sqrt(fan_in))."""
    ks = jax.random.split(key, 6)

    def lin(kw, kb, fan_in, fan_out):
        bound = 1.0 / jnp.sqrt(fan_in)
        W = jax.random.uniform(kw, (fan_in, fan_out), jnp.float32, -bound, bound)
        b = jax.random.uniform(kb, (fan_out,), jnp.float32, -bound, bound)
        return W, b

    W1, b1 = lin(ks[0], ks[1], state_dim, hidden)
    W2, b2 = lin(ks[2], ks[3], hidden, hidden)
    W3, b3 = lin(ks[4], ks[5], hidden, action_dim)
    return {"W1": W1, "b1": b1, "W2": W2, "b2": b2, "W3": W3, "b3": b3}


def _reference(state, params, max_action):
    h1 = jnp.maximum(state @ params["W1"] + params["b1"], 0.0)
    h2 = jnp.maximum(h1 @ params["W2"] + params["b2"], 0.0)
    return max_action * jnp.tanh(h2 @ params["W3"] + params["b3"])


if __name__ == "__main__":
    key = jax.random.PRNGKey(0)
    k_param, k_state, k_state2 = jax.random.split(key, 3)

    batch = 2
    state_dim = 8
    action_dim = 4
    max_action = 2.0

    params = init_actor_params(k_param, state_dim, action_dim)
    state = jax.random.normal(k_state, (batch, state_dim), jnp.float32)

    out = actor_forward(state, params, max_action)
    out = jax.block_until_ready(out)
    ref = _reference(state, params, max_action)
    assert out.shape == (batch, action_dim)
    # bf16 matmul inputs (f32 accumulation): loosen tolerance accordingly.
    assert jnp.allclose(out, ref, atol=2e-2, rtol=2e-2), (
        float(jnp.max(jnp.abs(out - ref))))

    # Exercise the multi-step batch grid path (weights resident across steps).
    big_batch = 300
    state_big = jax.random.normal(k_state2, (big_batch, state_dim), jnp.float32)
    out_big = actor_forward(state_big, params, max_action, block_b=128)
    out_big = jax.block_until_ready(out_big)
    ref_big = _reference(state_big, params, max_action)
    assert out_big.shape == (big_batch, action_dim)
    assert jnp.allclose(out_big, ref_big, atol=2e-2, rtol=2e-2), (
        float(jnp.max(jnp.abs(out_big - ref_big))))

    print("KERNEL_OK")
</pallas_src>

<mosaic_0001>
module attributes {stable_mosaic.version = 11 : i64} {
  func.func @_actor_kernel(%arg0: i32, %arg1: memref<8x8xf32, #tpu.memory_space<vmem>>, %arg2: memref<8x256xbf16, #tpu.memory_space<vmem>>, %arg3: memref<1x256xf32, #tpu.memory_space<vmem>>, %arg4: memref<256x256xbf16, #tpu.memory_space<vmem>>, %arg5: memref<1x256xf32, #tpu.memory_space<vmem>>, %arg6: memref<256x128xbf16, #tpu.memory_space<vmem>>, %arg7: memref<1x128xf32, #tpu.memory_space<vmem>>, %arg8: memref<8x128xf32, #tpu.memory_space<vmem>>) attributes {dimension_semantics = [#tpu.dimension_semantics<parallel>], iteration_bounds = array<i64: 1>, scalar_prefetch = 0 : i64, scratch_operands = 0 : i64, tpu.core_type = #tpu.core_type<tc>, window_params = [{transform_indices = @transform_0, window_bounds = array<i64: 8, 8>}, {pipeline_mode = #tpu.pipeline_mode<synchronous>, transform_indices = @transform_1, window_bounds = array<i64: 8, 256>}, {pipeline_mode = #tpu.pipeline_mode<synchronous>, transform_indices = @transform_2, window_bounds = array<i64: 1, 256>}, {pipeline_mode = #tpu.pipeline_mode<synchronous>, transform_indices = @transform_3, window_bounds = array<i64: 256, 256>}, {pipeline_mode = #tpu.pipeline_mode<synchronous>, transform_indices = @transform_4, window_bounds = array<i64: 1, 256>}, {pipeline_mode = #tpu.pipeline_mode<synchronous>, transform_indices = @transform_5, window_bounds = array<i64: 256, 128>}, {pipeline_mode = #tpu.pipeline_mode<synchronous>, transform_indices = @transform_6, window_bounds = array<i64: 1, 128>}, {transform_indices = @transform_7, window_bounds = array<i64: 8, 128>}]} {
    %c0 = arith.constant 0 : index
    %c0_0 = arith.constant 0 : index
    %0 = vector.load %arg1[%c0, %c0_0] : memref<8x8xf32, #tpu.memory_space<vmem>>, vector<8x8xf32>
    %1 = arith.truncf %0 : vector<8x8xf32> to vector<8x8xbf16>
    %c0_1 = arith.constant 0 : index
    %c0_2 = arith.constant 0 : index
    %2 = vector.load %arg2[%c0_1, %c0_2] : memref<8x256xbf16, #tpu.memory_space<vmem>>, vector<8x256xbf16>
    %cst = arith.constant dense<0.000000e+00> : vector<8x256xf32>
    %3 = tpu.matmul %1, %2, %cst {dimension_numbers = #tpu.dot_dimension_numbers<[1], [0], [0], [1], [0, 0, 1, 1], [], []>} : vector<8x8xbf16>, vector<8x256xbf16>, vector<8x256xf32> -> vector<8x256xf32>
    %c0_3 = arith.constant 0 : index
    %c0_4 = arith.constant 0 : index
    %4 = vector.load %arg3[%c0_3, %c0_4] : memref<1x256xf32, #tpu.memory_space<vmem>>, vector<1x256xf32>
    %5 = vector.broadcast %4 : vector<1x256xf32> to vector<8x256xf32>
    %6 = arith.addf %3, %5 : vector<8x256xf32>
    %cst_5 = arith.constant 0.000000e+00 : f32
    %7 = vector.broadcast %cst_5 : f32 to vector<8x256xf32>
    %8 = arith.maximumf %6, %7 : vector<8x256xf32>
    %9 = arith.truncf %8 : vector<8x256xf32> to vector<8x256xbf16>
    %c0_6 = arith.constant 0 : index
    %c0_7 = arith.constant 0 : index
    %10 = vector.load %arg4[%c0_6, %c0_7] : memref<256x256xbf16, #tpu.memory_space<vmem>>, vector<256x256xbf16>
    %cst_8 = arith.constant dense<0.000000e+00> : vector<8x256xf32>
    %11 = tpu.matmul %9, %10, %cst_8 {dimension_numbers = #tpu.dot_dimension_numbers<[1], [0], [0], [1], [0, 0, 1, 1], [], []>} : vector<8x256xbf16>, vector<256x256xbf16>, vector<8x256xf32> -> vector<8x256xf32>
    %c0_9 = arith.constant 0 : index
    %c0_10 = arith.constant 0 : index
    %12 = vector.load %arg5[%c0_9, %c0_10] : memref<1x256xf32, #tpu.memory_space<vmem>>, vector<1x256xf32>
    %13 = vector.broadcast %12 : vector<1x256xf32> to vector<8x256xf32>
    %14 = arith.addf %11, %13 : vector<8x256xf32>
    %cst_11 = arith.constant 0.000000e+00 : f32
    %15 = vector.broadcast %cst_11 : f32 to vector<8x256xf32>
    %16 = arith.maximumf %14, %15 : vector<8x256xf32>
    %17 = arith.truncf %16 : vector<8x256xf32> to vector<8x256xbf16>
    %c0_12 = arith.constant 0 : index
    %c0_13 = arith.constant 0 : index
    %18 = vector.load %arg6[%c0_12, %c0_13] : memref<256x128xbf16, #tpu.memory_space<vmem>>, vector<256x128xbf16>
    %cst_14 = arith.constant dense<0.000000e+00> : vector<8x128xf32>
    %19 = tpu.matmul %17, %18, %cst_14 {dimension_numbers = #tpu.dot_dimension_numbers<[1], [0], [0], [1], [0, 0, 1, 1], [], []>} : vector<8x256xbf16>, vector<256x128xbf16>, vector<8x128xf32> -> vector<8x128xf32>
    %c0_15 = arith.constant 0 : index
    %c0_16 = arith.constant 0 : index
    %20 = vector.load %arg7[%c0_15, %c0_16] : memref<1x128xf32, #tpu.memory_space<vmem>>, vector<1x128xf32>
    %21 = vector.broadcast %20 : vector<1x128xf32> to vector<8x128xf32>
    %22 = arith.addf %19, %21 : vector<8x128xf32>
    %23 = math.tanh %22 : vector<8x128xf32>
    %cst_17 = arith.constant 2.000000e+00 : f32
    %24 = vector.broadcast %cst_17 : f32 to vector<8x128xf32>
    %25 = arith.mulf %24, %23 : vector<8x128xf32>
    %c0_18 = arith.constant 0 : index
    %c0_19 = arith.constant 0 : index
    %26 = vector.load %arg8[%c0_18, %c0_19] : memref<8x128xf32, #tpu.memory_space<vmem>>, vector<8x128xf32>
    tpu.vector_store %arg8[%c0_18, %c0_19], %25 {strides = array<i32>} : memref<8x128xf32, #tpu.memory_space<vmem>>, vector<8x128xf32>,
    return
  }
  func.func @transform_0(%arg0: i32) -> (i32, i32) {
    %c0_i32 = arith.constant 0 : i32
    %c0_i32_0 = arith.constant 0 : i32
    return %arg0, %c0_i32 : i32, i32
  }
  func.func @transform_1(%arg0: i32) -> (i32, i32) {
    %c0_i32 = arith.constant 0 : i32
    %c0_i32_0 = arith.constant 0 : i32
    %c0_i32_1 = arith.constant 0 : i32
    return %c0_i32, %c0_i32_0 : i32, i32
  }
  func.func @transform_2(%arg0: i32) -> (i32, i32) {
    %c0_i32 = arith.constant 0 : i32
    %c0_i32_0 = arith.constant 0 : i32
    %c0_i32_1 = arith.constant 0 : i32
    return %c0_i32, %c0_i32_0 : i32, i32
  }
  func.func @transform_3(%arg0: i32) -> (i32, i32) {
    %c0_i32 = arith.constant 0 : i32
    %c0_i32_0 = arith.constant 0 : i32
    %c0_i32_1 = arith.constant 0 : i32
    return %c0_i32, %c0_i32_0 : i32, i32
  }
  func.func @transform_4(%arg0: i32) -> (i32, i32) {
    %c0_i32 = arith.constant 0 : i32
    %c0_i32_0 = arith.constant 0 : i32
    %c0_i32_1 = arith.constant 0 : i32
    return %c0_i32, %c0_i32_0 : i32, i32
  }
  func.func @transform_5(%arg0: i32) -> (i32, i32) {
    %c0_i32 = arith.constant 0 : i32
    %c0_i32_0 = arith.constant 0 : i32
    %c0_i32_1 = arith.constant 0 : i32
    return %c0_i32, %c0_i32_0 : i32, i32
  }
  func.func @transform_6(%arg0: i32) -> (i32, i32) {
    %c0_i32 = arith.constant 0 : i32
    %c0_i32_0 = arith.constant 0 : i32
    %c0_i32_1 = arith.constant 0 : i32
    return %c0_i32, %c0_i32_0 : i32, i32
  }
  func.func @transform_7(%arg0: i32) -> (i32, i32) {
    %c0_i32 = arith.constant 0 : i32
    %c0_i32_0 = arith.constant 0 : i32
    return %arg0, %c0_i32 : i32, i32
  }
}

</mosaic_0001>

<bundles_post_ra>
// kernel: tpu_custom_call.1
= control target key start
LH: loop header
LB: loop body
LE: loop exit
PB: predicated region body
PF: predicated region fallthrough
CT: control target
= control target key end

     0   :  { %12 = vsyncpa [#allocation3], 0  ;;  %s989_s0 = inlined_call_operand.hbm [shape: f32[8,8], index: 0, kind: input, shape index: {}]   ;;  %s990_s1 = inlined_call_operand.hbm [shape: bf16[8,256], index: 1, kind: input, shape index: {}]   ;;  %s991_s2 = inlined_call_operand.vmem [shape: f32[1,256], index: 2, kind: input, shape index: {}]   ;;  %s992_s3 = inlined_call_operand.hbm [shape: bf16[256,256], index: 3, kind: input, shape index: {}]   ;;  %s993_s4 = inlined_call_operand.vmem [shape: f32[1,256], index: 4, kind: input, shape index: {}]   ;;  %s994_s5 = inlined_call_operand.hbm [shape: bf16[256,128], index: 5, kind: input, shape index: {}]   ;;  %s995_s6 = inlined_call_operand.vmem [shape: f32[1,128], index: 6, kind: input, shape index: {}]   ;;  %s996_s7 = inlined_call_operand.hbm [shape: f32[8,128], index: 7, kind: output, shape index: {}]  }
   0x1   :  { %13 = vsyncpa [#allocation6], 0 }
   0x2   :  { %14 = vsyncpa [#allocation9], 0 }
   0x3   :  { %15 = vsyncpa [#allocation4], 0  ;;  %s870_s24 = smov [#allocation5]   ;;  %s871_s26 = smov [#allocation2]  }
   0x4   :  { %s32_s25 = sshll.u32 %s870_s24, 4  ;;  %s22_s27 = sshll.u32 %s871_s26, 4  ;;  %s33_s25 = int_to_ptr.vmem [resolvable:$true] %s32_s25  ;;  %s23_s27 = int_to_ptr.vmem [resolvable:$true] %s22_s27 }
   0x5   :  { %s752_s30 = scalar_lea.hbm %s990_s1, 128 }
   0x6   :  { %p753_p0 = scmp.ne.s32.totalorder %s990_s1, %s752_s30  ;;  %p756_p1 = scmp.lt.u32.totalorder %s752_s30, %s990_s1 }
   0x8   :  { %p758_p2 = pnand %p756_p1, %p753_p0 }
   0xa   :  { %761 = shalt.err (!%p758_p2)
}
   0xb   :  { %s762_s12 = scalar_lea.vmem %s33_s25, 128  ;;  %p767_p4 = scmp.lt.s32.totalorder %s33_s25, %s33_s25 }
   0xc   :  { %p763_p3 = scmp.ne.s32.totalorder %s33_s25, %s762_s12  ;;  %p768_p5 = scmp.lt.s32.totalorder %s762_s12, %s762_s12 }
   0xe   :  { %p769_p6 = por %p768_p5, %p767_p4 }
  0x10   :  { %p770_p7 = pnand %p769_p6, %p763_p3 }
  0x12   :  { %773 = shalt.err (!%p770_p7)
}
  0x13   :  { %35 = dma.hbm_to_vmem [thread:$0]  %s990_s1, 128, %s33_s25, [#allocation6]  }
  0x14   :  { %s774_s17 = scalar_lea.hbm %s989_s0, 128 }
  0x15   :  { %p775_p8 = scmp.ne.s32.totalorder %s989_s0, %s774_s17  ;;  %p778_p9 = scmp.lt.u32.totalorder %s774_s17, %s989_s0 }
  0x17   :  { %p780_p10 = pnand %p778_p9, %p775_p8 }
  0x19   :  { %783 = shalt.err (!%p780_p10)
}
  0x1a   :  { %s784_s22 = scalar_lea.vmem %s23_s27, 128  ;;  %p789_p12 = scmp.lt.s32.totalorder %s23_s27, %s23_s27 }
  0x1b   :  { %p785_p11 = scmp.ne.s32.totalorder %s23_s27, %s784_s22  ;;  %p790_p13 = scmp.lt.s32.totalorder %s784_s22, %s784_s22 }
  0x1d   :  { %p791_p0 = por %p790_p13, %p789_p12 }
  0x1f   :  { %p792_p1 = pnand %p791_p0, %p785_p11 }
  0x21   :  { %795 = shalt.err (!%p792_p1)
}
  0x22   :  { %25 = dma.hbm_to_vmem [thread:$0]  %s989_s0, 128, %s23_s27, [#allocation3]  }
  0x23   :  { %s872_s24 = smov [#allocation7]   ;;  %s796_s29 = scalar_lea.hbm %s992_s3, 4096 }
  0x24   :  { %s43_s25 = sshll.u32 %s872_s24, 4  ;;  %p797_p2 = scmp.ne.s32.totalorder %s992_s3, %s796_s29  ;;  %s44_s25 = int_to_ptr.vmem [resolvable:$true] %s43_s25 }
  0x25   :  { %p800_p3 = scmp.lt.u32.totalorder %s796_s29, %s992_s3 }
  0x27   :  { %p802_p4 = pnand %p800_p3, %p797_p2 }
  0x29   :  { %805 = shalt.err (!%p802_p4)
}
  0x2a   :  { %s806_s11 = scalar_lea.vmem %s44_s25, 4096  ;;  %p811_p6 = scmp.lt.s32.totalorder %s44_s25, %s44_s25 }
  0x2b   :  { %p807_p5 = scmp.ne.s32.totalorder %s44_s25, %s806_s11  ;;  %p812_p7 = scmp.lt.s32.totalorder %s806_s11, %s806_s11 }
  0x2d   :  { %p813_p8 = por %p812_p7, %p811_p6 }
  0x2f   :  { %p814_p9 = pnand %p813_p8, %p807_p5 }
  0x31   :  { %817 = shalt.err (!%p814_p9)
}
  0x32   :  { %s873_s0 = smov 128   ;;  %s874_s27 = smov 8  }
  0x33   :  { %49 = dma.hbm_to_vmem [thread:$0]  %s992_s3, 4096, %s44_s25, [#allocation6], %s873_s0, %s873_s0, %s874_s27  }
  0x34   :  { %s875_s14 = smov [#allocation8]   ;;  %s818_s18 = scalar_lea.hbm %s994_s5, 2048 }
  0x35   :  { %s57_s15 = sshll.u32 %s875_s14, 4  ;;  %p819_p10 = scmp.ne.s32.totalorder %s994_s5, %s818_s18  ;;  %s58_s15 = int_to_ptr.vmem [resolvable:$true] %s57_s15 }
  0x36   :  { %p822_p11 = scmp.lt.u32.totalorder %s818_s18, %s994_s5 }
  0x38   :  { %p824_p12 = pnand %p822_p11, %p819_p10 }
  0x3a   :  { %827 = shalt.err (!%p824_p12)
}
  0x3b   :  { %s828_s1 = scalar_lea.vmem %s58_s15, 2048  ;;  %p833_p0 = scmp.lt.s32.totalorder %s58_s15, %s58_s15 }
  0x3c   :  { %p829_p13 = scmp.ne.s32.totalorder %s58_s15, %s828_s1  ;;  %p834_p1 = scmp.lt.s32.totalorder %s828_s1, %s828_s1 }
  0x3e   :  { %p835_p2 = por %p834_p1, %p833_p0 }
  0x40   :  { %p836_p3 = pnand %p835_p2, %p829_p13 }
  0x42   :  { %839 = shalt.err (!%p836_p3)
}
  0x43   :  { %s876_s3 = smov 64   ;;  %s877_s23 = smov 4  }
  0x44   :  { %63 = dma.hbm_to_vmem [thread:$0]  %s994_s5, 2048, %s58_s15, [#allocation9], %s876_s3, %s876_s3, %s877_s23  }
  0x45   :  { %862 = dma.done.wait [#allocation3], 128  }
  0x46   :  { %863 = vsyncadd [#allocation3], 4294967168 }
  0x47   :  { %864 = dma.done.wait [#allocation6], 4224  }
  0x48   :  { %865 = vsyncadd [#allocation6], 4294963072 }
  0x49   :  { %866 = dma.done.wait [#allocation9], 2048  }
  0x4a   :  { %867 = vsyncadd [#allocation9], 4294965248  ;;  %v878_v0 = vmov 0   ;;  %v81_v1 = vld [vmem:[#allocation5] sm:$0xff]  ;;  %vm103_vm0 = vcmask 1043456   ;;  %v79_v2 = vld [vmem:[#allocation2] sm:$0xff]  ;;  %v84_v51 = vlaneseq }
  0x4b   :  { %142 = vmatprep.mubr.bf16.mxu0 %v878_v0  ;;  %v600_v3 = vcombine.high %v81_v1, %v81_v1  ;;  %v599_v4 = vcombine.low %v81_v1, %v81_v1  ;;  %v686_v5 = vld [vmem:[#allocation7 + $0x4] ss:$8 sps:$4 sm:$0xff]   ;;  %v688_v6 = vld [vmem:[#allocation7] ss:$8 sps:$4 sm:$0xff]   ;;  %v689_v7 = vld [vmem:[#allocation7 + $0x14] ss:$8 sps:$4 sm:$0xff]   ;;  %v80_v9 = vpack.c.bf16 %v79_v2, %v79_v2 }
  0x4c   :  { %359 = vmatprep.subr.bf16.mxu1 %v686_v5  ;;  %vm99_vm1 = vcmask 64512   ;;  %v691_v10 = vld [vmem:[#allocation7 + $0x10] ss:$8 sps:$4 sm:$0xff]   ;;  %v692_v11 = vld [vmem:[#allocation7 + $0x24] ss:$8 sps:$4 sm:$0xff]   ;;  %v85_v52 = vshrl.u32 %v84_v51, 7 }
  0x4d   :  { %601 = vmatprep.subr.msk.bf16.mxu0 %vm103_vm0, %v600_v3  ;;  %v105_v8 = vsel %vm103_vm0, %v599_v4, 0  ;;  %360 = vmatpush1.bf16.msra.mxu1 %v688_v6  ;;  %v694_v12 = vld [vmem:[#allocation7 + $0x20] ss:$8 sps:$4 sm:$0xff]   ;;  %v695_v13 = vld [vmem:[#allocation7 + $0x34] ss:$8 sps:$4 sm:$0xff]  }
  0x4e   :  { %111 = vmatpush1.bf16.msra.mxu0 %v105_v8  ;;  %361 = vmatprep.subr.bf16.mxu1 %v689_v7  ;;  %v697_v14 = vld [vmem:[#allocation7 + $0x30] ss:$8 sps:$4 sm:$0xff]   ;;  %v698_v15 = vld [vmem:[#allocation7 + $0x44] ss:$8 sps:$4 sm:$0xff]   ;;  %v700_v16 = vld [vmem:[#allocation7 + $0x40] ss:$8 sps:$4 sm:$0xff]  }
  0x4f   :  { %v701_v17 = vld [vmem:[#allocation7 + $0x54] ss:$8 sps:$4 sm:$0xff]   ;;  %v703_v18 = vld [vmem:[#allocation7 + $0x50] ss:$8 sps:$4 sm:$0xff]   ;;  %v704_v19 = vld [vmem:[#allocation7 + $0x64] ss:$8 sps:$4 sm:$0xff]  }
  0x50   :  { %v706_v20 = vld [vmem:[#allocation7 + $0x60] ss:$8 sps:$4 sm:$0xff]   ;;  %v707_v21 = vld [vmem:[#allocation7 + $0x74] ss:$8 sps:$4 sm:$0xff]   ;;  %v709_v22 = vld [vmem:[#allocation7 + $0x70] ss:$8 sps:$4 sm:$0xff]  }
  0x51   :  { %602 = vmatmul.mubr.msk.bf16.vlgmr.msra.gmra.mrb[0].mxu0 %vm99_vm1, %v80_v9  ;;  %362 = vmatpush1.bf16.msra.mxu1 %v691_v10  ;;  %v710_v23 = vld [vmem:[#allocation7 + $0x84] ss:$8 sps:$4 sm:$0xff]   ;;  %v712_v24 = vld [vmem:[#allocation7 + $0x80] ss:$8 sps:$4 sm:$0xff]   ;;  %v713_v25 = vld [vmem:[#allocation7 + $0x94] ss:$8 sps:$4 sm:$0xff]  }
  0x52   :  { %363 = vmatprep.subr.bf16.mxu1 %v692_v11  ;;  %v715_v26 = vld [vmem:[#allocation7 + $0x90] ss:$8 sps:$4 sm:$0xff]   ;;  %v716_v27 = vld [vmem:[#allocation7 + $0xa4] ss:$8 sps:$4 sm:$0xff]   ;;  %v718_v28 = vld [vmem:[#allocation7 + $0xa0] ss:$8 sps:$4 sm:$0xff]  }
  0x53   :  { %v719_v29 = vld [vmem:[#allocation7 + $0xb4] ss:$8 sps:$4 sm:$0xff]   ;;  %v721_v30 = vld [vmem:[#allocation7 + $0xb0] ss:$8 sps:$4 sm:$0xff]   ;;  %v722_v31 = vld [vmem:[#allocation7 + $0xc4] ss:$8 sps:$4 sm:$0xff]  }
  0x54   :  { %v724_v32 = vld [vmem:[#allocation7 + $0xc0] ss:$8 sps:$4 sm:$0xff]   ;;  %v725_v33 = vld [vmem:[#allocation7 + $0xd4] ss:$8 sps:$4 sm:$0xff]   ;;  %v727_v34 = vld [vmem:[#allocation7 + $0xd0] ss:$8 sps:$4 sm:$0xff]  }
  0x55   :  { %364 = vmatpush1.bf16.msra.mxu1 %v694_v12  ;;  %v728_v35 = vld [vmem:[#allocation7 + $0xe4] ss:$8 sps:$4 sm:$0xff]   ;;  %v730_v36 = vld [vmem:[#allocation7 + $0xe0] ss:$8 sps:$4 sm:$0xff]   ;;  %v731_v37 = vld [vmem:[#allocation7 + $0xf4] ss:$8 sps:$4 sm:$0xff]  }
  0x56   :  { %365 = vmatprep.subr.bf16.mxu1 %v695_v13  ;;  %v733_v38 = vld [vmem:[#allocation7 + $0xf0] ss:$8 sps:$4 sm:$0xff]   ;;  %v734_v39 = vld [vmem:[#allocation8 + $0x40] sm:$0xff]   ;;  %v736_v41 = vld [vmem:[#allocation8 + $0x48] sm:$0xff]   ;;  %v86_v53 = vsub.s32 0, %v85_v52  ;;  %v90_v55 = vsub.s32 1, %v85_v52 }
  0x57   :  { %v735_v40 = vld [vmem:[#allocation8] sm:$0xff]   ;;  %652 = vmatprep.subr.bf16.mxu0 %v734_v39  ;;  %v737_v42 = vld [vmem:[#allocation8 + $0x8] sm:$0xff]   ;;  %v738_v43 = vld [vmem:[#allocation8 + $0x50] sm:$0xff]  }
  0x58   :  { %653 = vmatpush3.bf16.msra.mxu0 %v735_v40  ;;  %v739_v44 = vld [vmem:[#allocation8 + $0x10] sm:$0xff]   ;;  %v740_v45 = vld [vmem:[#allocation8 + $0x58] sm:$0xff]   ;;  %v742_v47 = vld [vmem:[#allocation8 + $0x60] sm:$0xff]  }
  0x59   :  { %366 = vmatpush1.bf16.msra.mxu1 %v697_v14  ;;  %654 = vmatprep.subr.bf16.mxu0 %v736_v41  ;;  %v741_v46 = vld [vmem:[#allocation8 + $0x18] sm:$0xff]   ;;  %v743_v48 = vld [vmem:[#allocation8 + $0x20] sm:$0xff]   ;;  %v744_v49 = vld [vmem:[#allocation8 + $0x68] sm:$0xff]  }
  0x5a   :  { %367 = vmatprep.subr.bf16.mxu1 %v698_v15  ;;  %v745_v50 = vld [vmem:[#allocation8 + $0x28] sm:$0xff]   ;;  %v82_v54 = vld [vmem:[%s991_s2] sm:$0x3]  ;;  %v748_v6 = vld [vmem:[#allocation8 + $0x78] sm:$0xff]  }
  0x5b   :  { %v87_v56 = vrot.slane %v82_v54, %v86_v53  ;;  %v91_v57 = vrot.slane %v82_v54, %v90_v55  ;;  %v746_v4 = vld [vmem:[#allocation8 + $0x70] sm:$0xff]   ;;  %v749_v7 = vld [vmem:[#allocation8 + $0x38] sm:$0xff]  }
  0x5c   :  { %655 = vmatpush3.bf16.msra.mxu0 %v737_v42  ;;  %v747_v5 = vld [vmem:[#allocation8 + $0x30] sm:$0xff]  }
  0x5d   :  { %368 = vmatpush1.bf16.msra.mxu1 %v700_v16  ;;  %656 = vmatprep.subr.bf16.mxu0 %v738_v43  ;;  %v187_v8 = vld [vmem:[%s993_s4] sm:$0x3]  ;;  %s879_s4 = smov [#allocation10]  }
  0x5e   :  { %369 = vmatprep.subr.bf16.mxu1 %v701_v17  ;;  %v192_v9 = vrot.slane %v187_v8, %v86_v53  ;;  %v196_v10 = vrot.slane %v187_v8, %v90_v55  ;;  %s588_s8 = sshll.u32 %s879_s4, 4  ;;  %s589_s8 = int_to_ptr.vmem [resolvable:$true] %s588_s8 }
  0x5f   :  { %s840_s9 = scalar_lea.vmem %s589_s8, 128  ;;  %p845_p5 = scmp.lt.s32.totalorder %s589_s8, %s589_s8 }
  0x60   :  { %657 = vmatpush3.bf16.msra.mxu0 %v739_v44  ;;  %p841_p4 = scmp.ne.s32.totalorder %s589_s8, %s840_s9  ;;  %p846_p6 = scmp.lt.s32.totalorder %s840_s9, %s840_s9 }
  0x61   :  { %370 = vmatpush1.bf16.msra.mxu1 %v703_v18  ;;  %658 = vmatprep.subr.bf16.mxu0 %v740_v45 }
  0x62   :  { %371 = vmatprep.subr.bf16.mxu1 %v704_v19  ;;  %p847_p7 = por %p846_p6, %p845_p5 }
  0x64   :  { %659 = vmatpush3.bf16.msra.mxu0 %v741_v46  ;;  %p848_p8 = pnand %p847_p7, %p841_p4 }
  0x65   :  { %372 = vmatpush1.bf16.msra.mxu1 %v706_v20  ;;  %660 = vmatprep.subr.bf16.mxu0 %v742_v47 }
  0x66   :  { %373 = vmatprep.subr.bf16.mxu1 %v707_v21 }
  0x68   :  { %661 = vmatpush3.bf16.msra.mxu0 %v743_v48 }
  0x69   :  { %374 = vmatpush1.bf16.msra.mxu1 %v709_v22  ;;  %662 = vmatprep.subr.bf16.mxu0 %v744_v49  ;;  %v635_v22 = vld [vmem:[%s995_s6] ss:$0 sm:$0xff] }
  0x6a   :  { %375 = vmatprep.subr.bf16.mxu1 %v710_v23 }
  0x6c   :  { %663 = vmatpush3.bf16.msra.mxu0 %v745_v50 }
  0x6d   :  { %376 = vmatpush1.bf16.msra.mxu1 %v712_v24  ;;  %664 = vmatprep.subr.bf16.mxu0 %v746_v4 }
  0x6e   :  { %377 = vmatprep.subr.bf16.mxu1 %v713_v25 }
  0x70   :  { %665 = vmatpush3.bf16.msra.mxu0 %v747_v5 }
  0x71   :  { %378 = vmatpush1.bf16.msra.mxu1 %v715_v26  ;;  %666 = vmatprep.subr.bf16.mxu0 %v748_v6 }
  0x72   :  { %379 = vmatprep.subr.bf16.mxu1 %v716_v27 }
  0x74   :  { %667 = vmatpush3.bf16.msra.mxu0 %v749_v7 }
  0x75   :  { %380 = vmatpush1.bf16.msra.mxu1 %v718_v28 }
  0x76   :  { %381 = vmatprep.subr.bf16.mxu1 %v719_v29 }
  0x79   :  { %382 = vmatpush1.bf16.msra.mxu1 %v721_v30 }
  0x7a   :  { %383 = vmatprep.subr.bf16.mxu1 %v722_v31 }
  0x7d   :  { %384 = vmatpush1.bf16.msra.mxu1 %v724_v32 }
  0x7e   :  { %385 = vmatprep.subr.bf16.mxu1 %v725_v33 }
  0x81   :  { %386 = vmatpush1.bf16.msra.mxu1 %v727_v34 }
  0x82   :  { %387 = vmatprep.subr.bf16.mxu1 %v728_v35 }
  0x85   :  { %388 = vmatpush1.bf16.msra.mxu1 %v730_v36 }
  0x86   :  { %389 = vmatprep.subr.bf16.mxu1 %v731_v37 }
  0x89   :  { %390 = vmatpush1.bf16.msra.mxu1 %v733_v38 }
 0x124   :  { %v144_v58 = vpop.f32.mrb[0].mxu0 }
 0x125   :  { %v145_v59 = vadd.f32 %v144_v58, %v87_v56  ;;  %v146_v60 = vpop.f32.mrb[1].mxu0 }
 0x126   :  { %v147_v61 = vadd.f32 %v146_v60, %v91_v57  ;;  %v148_v62 = vpop.f32.mrb[2].mxu0 }
 0x127   :  { %v151_v63 = vmax.f32 %v145_v59, 0.0  ;;  %v149_v0 = vpop.f32.mrb[3].mxu0 }
 0x128   :  { %v152_v1 = vmax.f32 %v147_v61, 0.0 }
 0x129   :  { %v153_v3 = vpack.c.bf16 %v151_v63, %v151_v63 }
 0x12a   :  { %v154_v2 = vpack.c.bf16 %v152_v1, %v152_v1 }
 0x12c   :  { %391 = vmatprep.mubr.bf16.mxu1 %v154_v2 }
 0x12d   :  { %392 = vmatmul.mubr.bf16.vlgmr.msra.gmra.mrb[0].mxu1 %v153_v3 }
 0x200   :  { %v393_v11 = vpop.f32.mrb[0].mxu1 }
 0x201   :  { %v394_v12 = vadd.f32 %v393_v11, %v192_v9  ;;  %v395_v13 = vpop.f32.mrb[1].mxu1 }
 0x202   :  { %v396_v14 = vadd.f32 %v395_v13, %v196_v10  ;;  %v397_v15 = vpop.f32.mrb[2].mxu1 }
 0x203   :  { %v400_v16 = vmax.f32 %v394_v12, 0.0  ;;  %v398_v17 = vpop.f32.mrb[3].mxu1 }
 0x204   :  { %v401_v18 = vmax.f32 %v396_v14, 0.0 }
 0x205   :  { %v402_v20 = vpack.c.bf16 %v400_v16, %v400_v16 }
 0x206   :  { %v403_v19 = vpack.c.bf16 %v401_v18, %v401_v18 }
 0x208   :  { %571 = vmatprep.mubr.bf16.mxu0 %v403_v19 }
 0x209   :  { %572 = vmatmul.mubr.bf16.vlgmr.msra.gmra.mrb[4].mxu0 %v402_v20 }
 0x2dc   :  { %v668_v21 = vpop.f32.mrb[4].mxu0 }
 0x2dd   :  { %v669_v23 = vpop.f32.mrb[5].mxu0 }
 0x2de   :  { %v670_v24 = vadd.f32 %v669_v23, %v668_v21  ;;  %v671_v25 = vpop.f32.mrb[6].mxu0 }
 0x2df   :  { %v672_v26 = vpop.f32.mrb[7].mxu0 }
 0x2e0   :  { %v574_v27 = vadd.f32 %v670_v24, %v635_v22 }
 0x2e2   :  { %750 = vtanh.f32 %v574_v27 }
 0x2ec   :  { %v751_v28 = vpop.eup %750 }
 0x2ed   :  { %v580_v29 = vmul.f32 2.0, %v751_v28 }
 0x2ef   :  { %581 = vst [vmem:[#allocation10] sm:$0xff] %v580_v29 }
 0x2f0   :  { %851 = shalt.err (!%p848_p8)
}
 0x2f1   :  { %s852_s11 = scalar_lea.hbm %s996_s7, 128 }
 0x2f2   :  { %p853_p9 = scmp.ne.s32.totalorder %s996_s7, %s852_s11  ;;  %p856_p10 = scmp.lt.u32.totalorder %s852_s11, %s996_s7 }
 0x2f4   :  { %p858_p11 = pnand %p856_p10, %p853_p9 }
 0x2f6   :  { %861 = shalt.err (!%p858_p11)
}
 0x2f7   :  { %591 = dma.vmem_to_hbm [thread:$0]  %s589_s8, 128, %s996_s7, [#allocation4]  }
 0x2f8   :  { %868 = dma.done.wait [#allocation4], 128  }
 0x2f9   :  { %869 = vsyncadd [#allocation4], 4294967168 }
 0x2fa   :  { %595 = vsyncpa [#allocation3], 1 }
 0x2fb   :  { %596 = vsyncpa [#allocation6], 1 }
 0x2fc   :  { %597 = vsyncpa [#allocation9], 1 }
 0x2fd   :  { %598 = vsyncpa [#allocation4], 1 }

</bundles_post_ra>
